<compile_context>
chip_gen: v7x
topology: tpu7x:2x2x1
jax: 0.10.0
libtpu: 0.0.40
codegen_flags: <defaults>
</compile_context>

<pallas_src>
import math

import jax
import jax.numpy as jnp
import numpy as np
from jax import lax
from jax.experimental import pallas as pl
from jax.experimental.pallas import tpu as pltpu


# ----------------------------------------------------------------------------
# Host-side glue: 1-D bilinear interpolation matrices implied by grid_sample
# (align_corners=False, padding_mode='zeros') for the axis-aligned BEV grid.
# ----------------------------------------------------------------------------
def _output_coords(input_scope_d, output_scope_d):
    """Normalized ([-1, 1]) sampling coordinates along one axis, built exactly
    as the PyTorch module builds them (torch.arange endpoint semantics)."""
    imin, imax, _ = input_scope_d
    omin, omax, ostep = output_scope_d
    v = np.arange(omin + ostep / 2.0, omax, ostep, dtype=np.float64)
    return (v - imin) / (imax - imin) * 2.0 - 1.0


def _interp_matrix(coords_norm, in_size):
    """Rows = output positions, cols = input positions; bilinear weights with
    align_corners=False; out-of-range neighbors contribute 0 (zeros padding)."""
    un = ((np.asarray(coords_norm, np.float64) + 1.0) * in_size - 1.0) / 2.0
    i0 = np.floor(un)
    w1 = un - i0
    w0 = 1.0 - w1
    i0i = i0.astype(np.int64)
    i1i = i0i + 1
    cols = np.arange(in_size)
    hit0 = (i0i[:, None] == cols[None, :]) & (i0i[:, None] >= 0) & (i0i[:, None] < in_size)
    hit1 = (i1i[:, None] == cols[None, :]) & (i1i[:, None] >= 0) & (i1i[:, None] < in_size)
    m = np.where(hit0, w0[:, None], 0.0) + np.where(hit1, w1[:, None], 0.0)
    return m.astype(np.float32)


def _physical_vmem_bytes():
    default = 64 * 1024 * 1024                     # v7x per-TensorCore floor
    try:
        v = int(pltpu.get_tpu_info().vmem_capacity_bytes)
        return max(32 * 1024 * 1024, min(v, 128 * 1024 * 1024))
    except Exception:
        return default


def _choose_channel_block(nc, h_in, per_channel_bytes, budget_bytes, *,
                          min_steps=4, max_tc=None):
    """Channel-block size TC.  Constraints:
      * fits the VMEM tile budget,
      * grid has >= min_steps steps (>= 2 per v7x core, DMA/compute overlap),
      * TC*H_in is a multiple of 8 so the (TC*H_in, W_in) input block is
        sublane-aligned (unless TC == NC, a full-extent block is always legal).
    TC does NOT have to divide NC (ragged last block handled by Pallas)."""
    cap_mem = max(1, int(budget_bytes) // max(int(per_channel_bytes), 1))
    cap_par = max(1, pl.cdiv(nc, max(int(min_steps), 1)))
    tc = max(1, min(nc, cap_mem, cap_par))
    if max_tc is not None:
        tc = max(1, min(tc, int(max_tc)))
    align = 8 // math.gcd(h_in, 8)
    if align > 1 and tc < nc:
        if tc >= align:
            tc = (tc // align) * align
        else:
            tc = nc  # full-extent block is always layout-legal (rare fallback)
    return tc


# ----------------------------------------------------------------------------
# Pallas kernel: one channel block of TC slices per grid step.
#   W-pass:  ONE fused MXU matmul   (TC*H_in, W_in) @ (W_in, W_out)   -> y
#   H-pass:  per-channel matmuls    (H_out, H_in)   @ (H_in, W_out)   -> out
# bf16 MXU inputs (cast in VMEM), f32 accumulation.
# ----------------------------------------------------------------------------
def _bev_resample_kernel(a_h_ref, a_wt_ref, x_ref, o_ref, y_ref):
    tc, _, _ = o_ref.shape
    h_in = a_h_ref.shape[1]
    a_h = a_h_ref[...]                       # (H_out, H_in)  bf16, VMEM-resident
    a_wt = a_wt_ref[...]                     # (W_in, W_out)  bf16, VMEM-resident

    # W-pass: fused over all TC channels; cast the input tile to bf16 here
    # (no standalone HBM cast pass in the wrapper).
    x_bf = x_ref[...].astype(jnp.bfloat16)                      # (TC*H_in, W_in)
    y_ref[...] = jnp.dot(x_bf, a_wt,
                         preferred_element_type=jnp.float32).astype(jnp.bfloat16)

    # H-pass: per-channel; fori_loop bounds live ranges (no 64-wide unroll).
    # TODO(synk): make A_h the MXU-stationary operand (single fused matmul on a
    # transposed y) if a bundle dump ever shows this MXU-bound; at realistic
    # BEV sizes the op is HBM-bound and the per-channel weight push is hidden.
    def body(i, carry):
        r0 = pl.multiple_of(i * h_in, h_in)
        y_i = y_ref[pl.ds(r0, h_in), :]                         # (H_in, W_out) bf16
        o_ref[i] = jnp.dot(a_h, y_i,
                           preferred_element_type=jnp.float32).astype(o_ref.dtype)
        return carry

    lax.fori_loop(0, tc, body, 0, unroll=min(4, tc))


def bev_grid_transform(x, *, input_scope, output_scope, prescale_factor=1,
                       out_dtype=None, min_grid_steps=4, max_channel_block=None):
    """x: (N, C, H_in, W_in), NCHW (matches the PyTorch module).
    out_dtype: None -> x.dtype (module semantics); jnp.bfloat16 halves the
    dominant HBM store term when the consumer accepts it."""
    if prescale_factor != 1:
        # TODO(synk): compose the F.interpolate(bilinear, align_corners=False)
        # prescale (also separable) into A_h / A_w instead of raising.
        raise NotImplementedError("prescale_factor != 1 not implemented")

    n, c, h_in, w_in = x.shape
    nc = n * c
    out_dtype = x.dtype if out_dtype is None else jnp.dtype(out_dtype)

    # scope[0] drives rows/H, scope[1] drives cols/W, exactly as in the module
    # (grid = stack([v, u], -1) fed to grid_sample).
    u = _output_coords(input_scope[0], output_scope[0])        # (H_out,)
    v = _output_coords(input_scope[1], output_scope[1])        # (W_out,)
    h_out, w_out = int(u.shape[0]), int(v.shape[0])

    a_h = jnp.asarray(_interp_matrix(u, h_in), dtype=jnp.bfloat16)      # (H_out, H_in)
    a_wt = jnp.asarray(_interp_matrix(v, w_in).T, dtype=jnp.bfloat16)   # (W_in,  W_out)

    # Free layout-only reshape (leading-dim merge).  No dtype cast of x here:
    # the kernel casts each tile to bf16 after it lands in VMEM.
    x2d = x.reshape(nc * h_in, w_in)

    # ---- channel-block sizing from the per-generation VMEM budget -----------
    phys_vmem = _physical_vmem_bytes()             # 64 MiB v7x, 128 MiB v5e/v6e
    vmem_limit = (phys_vmem * 3) // 4              # explicit scoped-VMEM limit
    tile_budget = vmem_limit // 2                  # ~50% headroom (spills, matmul temps)
    in_b = jnp.dtype(x.dtype).itemsize
    out_b = jnp.dtype(out_dtype).itemsize
    fixed_bytes = 2 * (h_out * h_in + w_in * w_out) * 2   # A mats, 2x-buffered bf16
    # TODO(synk): pipeline_mode=pl.Buffered(1) on the constant A-matrix specs
    # would single-buffer them and free a little more VMEM on v7x.
    per_channel_bytes = (
        2 * h_in * w_in * in_b             # double-buffered input tile rows
        + 2 * h_out * w_out * out_b        # double-buffered output tile
        + h_in * w_out * 2                 # bf16 y scratch
    )
    tc = _choose_channel_block(nc, h_in, per_channel_bytes,
                               tile_budget - fixed_bytes,
                               min_steps=min_grid_steps, max_tc=max_channel_block)
    steps = pl.cdiv(nc, tc)

    flops = 2 * nc * h_in * w_out * (w_in + h_out)
    bytes_accessed = (nc * h_in * w_in * in_b + nc * h_out * w_out * out_b
                      + (h_out * h_in + w_in * w_out) * 2)

    out_flat = pl.pallas_call(
        _bev_resample_kernel,
        out_shape=jax.ShapeDtypeStruct((nc, h_out, w_out), out_dtype),
        grid=(steps,),
        in_specs=[
            # A_h / A_wt are grid-invariant (constant index_map): Pallas keeps
            # them resident in VMEM and never re-DMAs them.
            pl.BlockSpec((h_out, h_in), lambda b: (0, 0)),
            pl.BlockSpec((w_in, w_out), lambda b: (0, 0)),
            # 2-D input slab: TC*H_in rows per step (sublane-aligned by tc choice).
            pl.BlockSpec((tc * h_in, w_in), lambda b: (b, 0)),
        ],
        # Unpadded output; last two block dims equal the full array dims.
        out_specs=pl.BlockSpec((tc, h_out, w_out), lambda b: (b, 0, 0)),
        scratch_shapes=[pltpu.VMEM((tc * h_in, w_out), jnp.bfloat16)],
        compiler_params=pltpu.CompilerParams(
            dimension_semantics=("parallel",),
            vmem_limit_bytes=int(vmem_limit),
        ),
        cost_estimate=pl.CostEstimate(flops=int(flops), transcendentals=0,
                                      bytes_accessed=int(bytes_accessed)),
    )(a_h, a_wt, x2d)

    return out_flat.reshape(n, c, h_out, w_out)    # free leading-dim split


# ----------------------------------------------------------------------------
# Literal (non-separable) reference of the PyTorch forward, for the self-test:
# builds the grid exactly as the module does and does a full bilinear
# grid_sample gather.  Catches any H/W axis swap in the kernel path.
# ----------------------------------------------------------------------------
def _bev_grid_transform_ref(x, input_scope, output_scope):
    xh = np.asarray(x, dtype=np.float32)
    h_in, w_in = xh.shape[2], xh.shape[3]
    coords = []
    for (imin, imax, _), (omin, omax, ostep) in zip(input_scope, output_scope):
        vv = np.arange(omin + ostep / 2.0, omax, ostep, dtype=np.float64)
        coords.append((vv - imin) / (imax - imin) * 2.0 - 1.0)
    uu, vv = np.meshgrid(coords[0], coords[1], indexing="ij")
    gx = vv.astype(np.float64)                     # x coordinate -> width
    gy = uu.astype(np.float64)                     # y coordinate -> height
    fx = ((gx + 1.0) * w_in - 1.0) / 2.0
    fy = ((gy + 1.0) * h_in - 1.0) / 2.0
    x0, y0 = np.floor(fx), np.floor(fy)
    wx1, wy1 = fx - x0, fy - y0

    def tap(ix, iy, w):
        valid = (ix >= 0) & (ix < w_in) & (iy >= 0) & (iy < h_in)
        ixc = np.clip(ix, 0, w_in - 1).astype(np.int64)
        iyc = np.clip(iy, 0, h_in - 1).astype(np.int64)
        gathered = xh[:, :, iyc, ixc]              # (N, C, H_out, W_out)
        return gathered * (w * valid)[None, None]

    return (tap(x0, y0, (1 - wx1) * (1 - wy1)) + tap(x0 + 1, y0, wx1 * (1 - wy1))
            + tap(x0, y0 + 1, (1 - wx1) * wy1) + tap(x0 + 1, y0 + 1, wx1 * wy1))


if __name__ == "__main__":
    key = jax.random.PRNGKey(0)

    # Deliberately asymmetric H/W so an axis swap vs. the module would be caught.
    input_scope = [(-8.0, 8.0, 1.0), (-6.0, 6.0, 0.5)]     # H_in = 16, W_in = 24
    output_scope = [(-8.0, 8.0, 2.0 / 3.0), (-6.0, 6.0, 0.3)]  # H_out = 24, W_out = 40

    # Case A: f32 output (module semantics), NC divisible by the channel block.
    k1, k2 = jax.random.split(key)
    x1 = jax.random.normal(k1, (2, 4, 16, 24), dtype=jnp.float32)
    out1 = bev_grid_transform(x1, input_scope=input_scope,
                              output_scope=output_scope, prescale_factor=1)
    out1 = jax.block_until_ready(out1)
    ref1 = _bev_grid_transform_ref(x1, input_scope, output_scope)
    assert out1.shape == (2, 4, 24, 40), out1.shape
    np.testing.assert_allclose(np.asarray(out1, dtype=np.float32), ref1,
                               rtol=5e-2, atol=5e-2)

    # Case B: ragged NC (5 channels, TC=2 -> masked last block) + bf16 output flag.
    x2 = jax.random.normal(k2, (1, 5, 16, 24), dtype=jnp.float32)
    out2 = bev_grid_transform(x2, input_scope=input_scope,
                              output_scope=output_scope, prescale_factor=1,
                              out_dtype=jnp.bfloat16)
    out2 = jax.block_until_ready(out2)
    ref2 = _bev_grid_transform_ref(x2, input_scope, output_scope)
    assert out2.shape == (1, 5, 24, 40), out2.shape
    assert out2.dtype == jnp.bfloat16
    np.testing.assert_allclose(np.array(out2, dtype=np.float32), ref2,
                               rtol=6e-2, atol=6e-2)

    print("KERNEL_OK")
</pallas_src>

<mosaic_0001>
module attributes {stable_mosaic.version = 11 : i64} {
  func.func @_bev_resample_kernel(%arg0: i32, %arg1: memref<24x16xbf16, #tpu.memory_space<vmem>>, %arg2: memref<24x40xbf16, #tpu.memory_space<vmem>>, %arg3: memref<32x24xf32, #tpu.memory_space<vmem>>, %arg4: memref<2x24x40xf32, #tpu.memory_space<vmem>>, %arg5: memref<32x40xbf16, #tpu.memory_space<vmem>>) attributes {dimension_semantics = [#tpu.dimension_semantics<parallel>], iteration_bounds = array<i64: 4>, scalar_prefetch = 0 : i64, scratch_operands = 1 : i64, tpu.core_type = #tpu.core_type<tc>, window_params = [{pipeline_mode = #tpu.pipeline_mode<synchronous>, transform_indices = @transform_0, window_bounds = array<i64: 24, 16>}, {pipeline_mode = #tpu.pipeline_mode<synchronous>, transform_indices = @transform_1, window_bounds = array<i64: 24, 40>}, {transform_indices = @transform_2, window_bounds = array<i64: 32, 24>}, {transform_indices = @transform_3, window_bounds = array<i64: 2, 24, 40>}]} {
    %c0 = arith.constant 0 : index
    %c0_0 = arith.constant 0 : index
    %0 = vector.load %arg1[%c0, %c0_0] : memref<24x16xbf16, #tpu.memory_space<vmem>>, vector<24x16xbf16>
    %c0_1 = arith.constant 0 : index
    %c0_2 = arith.constant 0 : index
    %1 = vector.load %arg2[%c0_1, %c0_2] : memref<24x40xbf16, #tpu.memory_space<vmem>>, vector<24x40xbf16>
    %c0_3 = arith.constant 0 : index
    %c0_4 = arith.constant 0 : index
    %2 = vector.load %arg3[%c0_3, %c0_4] : memref<32x24xf32, #tpu.memory_space<vmem>>, vector<32x24xf32>
    %3 = arith.truncf %2 : vector<32x24xf32> to vector<32x24xbf16>
    %cst = arith.constant dense<0.000000e+00> : vector<32x40xf32>
    %4 = tpu.matmul %3, %1, %cst {dimension_numbers = #tpu.dot_dimension_numbers<[1], [0], [0], [1], [0, 0, 1, 1], [], []>} : vector<32x24xbf16>, vector<24x40xbf16>, vector<32x40xf32> -> vector<32x40xf32>
    %5 = arith.truncf %4 : vector<32x40xf32> to vector<32x40xbf16>
    %c0_5 = arith.constant 0 : index
    %c0_6 = arith.constant 0 : index
    %6 = vector.load %arg5[%c0_5, %c0_6] : memref<32x40xbf16, #tpu.memory_space<vmem>>, vector<32x40xbf16>
    tpu.vector_store %arg5[%c0_5, %c0_6], %5 {strides = array<i32>} : memref<32x40xbf16, #tpu.memory_space<vmem>>, vector<32x40xbf16>,
    %c0_i32 = arith.constant 0 : i32
    %c16_i32 = arith.constant 16 : i32
    %7 = arith.muli %c0_i32, %c16_i32 : i32
    %8 = tpu.assume_multiple %7, 16 : i32
    %9 = arith.index_cast %8 : i32 to index
    %c0_7 = arith.constant 0 : index
    %10 = vector.load %arg5[%9, %c0_7] : memref<32x40xbf16, #tpu.memory_space<vmem>>, vector<16x40xbf16>
    %cst_8 = arith.constant dense<0.000000e+00> : vector<24x40xf32>
    %11 = tpu.matmul %0, %10, %cst_8 {dimension_numbers = #tpu.dot_dimension_numbers<[1], [0], [0], [1], [0, 0, 1, 1], [], []>} : vector<24x16xbf16>, vector<16x40xbf16>, vector<24x40xf32> -> vector<24x40xf32>
    %12 = arith.index_cast %c0_i32 : i32 to index
    %c0_9 = arith.constant 0 : index
    %c0_10 = arith.constant 0 : index
    %13 = vector.load %arg4[%12, %c0_9, %c0_10] : memref<2x24x40xf32, #tpu.memory_space<vmem>>, vector<1x24x40xf32>
    %14 = vector.shape_cast %13 : vector<1x24x40xf32> to vector<24x40xf32>
    %15 = vector.shape_cast %11 : vector<24x40xf32> to vector<1x24x40xf32>
    tpu.vector_store %arg4[%12, %c0_9, %c0_10], %15 {strides = array<i32>} : memref<2x24x40xf32, #tpu.memory_space<vmem>>, vector<1x24x40xf32>,
    %c1_i32 = arith.constant 1 : i32
    %c16_i32_11 = arith.constant 16 : i32
    %16 = arith.muli %c1_i32, %c16_i32_11 : i32
    %17 = tpu.assume_multiple %16, 16 : i32
    %18 = arith.index_cast %17 : i32 to index
    %c0_12 = arith.constant 0 : index
    %19 = vector.load %arg5[%18, %c0_12] : memref<32x40xbf16, #tpu.memory_space<vmem>>, vector<16x40xbf16>
    %cst_13 = arith.constant dense<0.000000e+00> : vector<24x40xf32>
    %20 = tpu.matmul %0, %19, %cst_13 {dimension_numbers = #tpu.dot_dimension_numbers<[1], [0], [0], [1], [0, 0, 1, 1], [], []>} : vector<24x16xbf16>, vector<16x40xbf16>, vector<24x40xf32> -> vector<24x40xf32>
    %21 = arith.index_cast %c1_i32 : i32 to index
    %c0_14 = arith.constant 0 : index
    %c0_15 = arith.constant 0 : index
    %22 = vector.load %arg4[%21, %c0_14, %c0_15] : memref<2x24x40xf32, #tpu.memory_space<vmem>>, vector<1x24x40xf32>
    %23 = vector.shape_cast %22 : vector<1x24x40xf32> to vector<24x40xf32>
    %24 = vector.shape_cast %20 : vector<24x40xf32> to vector<1x24x40xf32>
    tpu.vector_store %arg4[%21, %c0_14, %c0_15], %24 {strides = array<i32>} : memref<2x24x40xf32, #tpu.memory_space<vmem>>, vector<1x24x40xf32>,
    %c2_i32 = arith.constant 2 : i32
    return
  }
  func.func @transform_0(%arg0: i32) -> (i32, i32) {
    %c0_i32 = arith.constant 0 : i32
    %c0_i32_0 = arith.constant 0 : i32
    %c0_i32_1 = arith.constant 0 : i32
    return %c0_i32, %c0_i32_0 : i32, i32
  }
  func.func @transform_1(%arg0: i32) -> (i32, i32) {
    %c0_i32 = arith.constant 0 : i32
    %c0_i32_0 = arith.constant 0 : i32
    %c0_i32_1 = arith.constant 0 : i32
    return %c0_i32, %c0_i32_0 : i32, i32
  }
  func.func @transform_2(%arg0: i32) -> (i32, i32) {
    %c0_i32 = arith.constant 0 : i32
    %c0_i32_0 = arith.constant 0 : i32
    return %arg0, %c0_i32 : i32, i32
  }
  func.func @transform_3(%arg0: i32) -> (i32, i32, i32) {
    %c0_i32 = arith.constant 0 : i32
    %c0_i32_0 = arith.constant 0 : i32
    %c0_i32_1 = arith.constant 0 : i32
    return %arg0, %c0_i32, %c0_i32_0 : i32, i32, i32
  }
}

</mosaic_0001>

<bundles_post_ra>
// kernel: tpu_custom_call.1
= control target key start
LH: loop header
LB: loop body
LE: loop exit
PB: predicated region body
PF: predicated region fallthrough
CT: control target
= control target key end

     0   :  { %8 = vsyncpa [#allocation4], 0  ;;  %s772_s0 = inlined_call_operand.vmem [shape: bf16[24,16], index: 0, kind: input, shape index: {}]   ;;  %s773_s1 = inlined_call_operand.vmem [shape: bf16[24,40], index: 1, kind: input, shape index: {}]   ;;  %s774_s2 = inlined_call_operand.vmem [shape: f32[128,24], index: 2, kind: input, shape index: {}]   ;;  %s775_s3 = inlined_call_operand.hbm [shape: f32[8,24,40], index: 3, kind: output, shape index: {}]  }
   0x1   :  { %10 = vsyncpa [#allocation4 + $0x1], 0  ;;  %s646_s12 = smov 0   ;;  %s648_s13 = smov 0  }
   0x2   :  { %s650_s14 = smov 0   ;;  %s652_s15 = smov 0  }
   0x3 LB: > { %s667_s16 = sadd.s32 4294967295, %s621_s15   ;;  %s457_s17 = sadd.s32 4294967294, %s621_s15   ;;  %s621_s15 = sphi %s652_s15, %s781_s15   ;;  %s617_s14 = sphi %s650_s14, %s780_s14   ;;  %s613_s13 = sphi %s648_s13, %s779_s13   ;;  %s609_s12 = sphi %s646_s12, %s778_s12  }
   0x4   : > { %s671_s18 = sadd.s32 1, %s621_s15   ;;  %s91_s19 = sadd.s32 1, %s617_s14 }
   0x5   : > { %s88_s20 = ssub.s32 %s621_s15, %s671_s18  ;;  %p101_p0 = scmp.ne.s32.totalorder %s617_s14, %s613_s13 }
   0x6   : > { %p89_p1 = scmp.eq.s32.totalorder %s88_s20, 0  ;;  %p102_p2 = scmp.eq.s32.totalorder %s667_s16, 3 }
   0x7   : > { %p107_p3 = scmp.ne.s32.totalorder %s613_s13, %s609_s12  ;;  %p108_p4 = scmp.eq.s32.totalorder %s457_s17, 3 }
   0x8   : > { %s682_s21 = scalar_select %p89_p1, %s617_s14, %s91_s19  }
   0x9   : > { %p684_p5 = por %p102_p2, %p101_p0  ;;  %p688_p6 = por %p108_p4, %p107_p3 }
   0xa   : > { %p460_p7 = scmp.ge.s32.totalorder %s621_s15, 1  ;;  %p141_p8 = scmp.lt.s32.totalorder %s621_s15, 5 }
   0xc   : > { %p142_p9 = pnand %p460_p7, %p141_p8 }
   0xd   : > { %v555_v0 = vld [vmem:[%s773_s1] sm:$0xff] (!%p142_p9)   ;;  %v556_v1 = vld [vmem:[%s773_s1 + $0x8] ss:$0 sps:$4 sm:$0xff] (!%p142_p9)   ;;  %vm201_vm0 = vcmask (!%p142_p9), 1043456   ;;  %s461_s28 = sshll.u32 (!%p142_p9), %s667_s16, 2  ;;  %vm194_vm1 = vcmask (!%p142_p9), 195584  }
   0xe   : > { %145 = sbr.rel (%p142_p9) target bundleno = 495 (0x1ef), region = 32  ;;  %491 = vmatprep.subr.bf16.mxu0 (!%p142_p9), %v555_v0  ;;  %p166_p10 = scmp.lt.s32.totalorder (!%p142_p9), %s461_s28, 15  ;;  %v203_v2 = vsel (!%p142_p9), %vm201_vm0, %v556_v1, 0  ;;  %v557_v9 = vld [vmem:[%s772_s0] sm:$0xff] (!%p142_p9)   ;;  %vm268_vm2 = vcmask (!%p142_p9), 130048   ;;  %vm256_vm3 = vcmask (!%p142_p9), 326656  }
   0xf   : > { %492 = vmatpush3.bf16.msra.mxu0 (!%p142_p9), %v555_v0  ;;  %501 = vmatprep.mubr.msk.bf16.mxu1 (!%p142_p9), %vm268_vm2, %v557_v9  ;;  %v558_v17 = vld [vmem:[%s772_s0 + $0x8] ss:$0 sps:$4 sm:$0xff] (!%p142_p9)   ;;  %s162_s10 = sand.u32 (!%p142_p9), 1, %s613_s13   ;;  %s513_s19 = smul.u32 (!%p142_p9), 768, %s667_s16 }
  0x10   : > { %511 = vmatprep.subr.msk.bf16.mxu0 (!%p142_p9), %vm201_vm0, %v556_v1  ;;  %s512_s11 = smul.u32 (!%p142_p9), 48, %s162_s10  ;;  %s731_s16 = scalar_lea.sflag (!%p142_p9), [#allocation4], %s162_s10 }
  0x11   : > { %s727_s26 = scalar_lea.hbm (!%p142_p9), %s775_s3, %s513_s19 }
  0x12   : > { %s164_s17 = scalar_lea.vmem (!%p142_p9), [#allocation3], %s512_s11 }
  0x13   : > { %494 = vmatpush3.bf16.msra.mxu0 (!%p142_p9), %v203_v2  ;;  %s395_s20 = sshll.u32 (!%p142_p9), %s164_s17, 4  ;;  %s721_s20 = int_to_ptr.vmem [resolvable:$true] %s395_s20 }
  0x14   : > { %s559_s27 = scalar_lea.vmem (!%p142_p9), %s721_s20, 768 }
  0x15   : > { %s783_s28 = smov (!%p166_p10, %s461_s28), 15  ;;  %p560_p11 = scmp.ne.s32.totalorder %s721_s20, %s559_s27 }
  0x16   : > { %s462_s29 = sshll.u32 %s783_s28, 3  ;;  %s623_s28 = smov [#allocation3]  }
  0x17   : > { %s169_s5 = scalar_lea.vmem %s774_s2, %s462_s29  ;;  %p561_p12 = pnand %p560_p11, %p684_p5 }
  0x18   : > { %v179_v3 = vld [vmem:[%s169_s5] sm:$0xff]  ;;  %v180_v4 = vld [vmem:[%s169_s5 + $0x8] sm:$0xff]  ;;  %v181_v5 = vld [vmem:[%s169_s5 + $0x10] sm:$0xff]  ;;  %s563_s29 = sshll.u32 %s623_s28, 4  ;;  %s564_s29 = int_to_ptr.vmem [resolvable:$false] %s563_s29 }
  0x19   : > { %v183_v6 = vpack.c.bf16 %v180_v4, %v179_v3  ;;  %v182_v7 = vld [vmem:[%s169_s5 + $0x18] sm:$0xff]  ;;  %p562_p13 = pneg %p561_p12  ;;  %s565_s30 = scalar_lea.vmem %s564_s29, 1536 }
  0x1a   : > { %v184_v8 = vpack.c.bf16 %v182_v7, %v181_v5  ;;  %p566_p0 = scmp.lt.s32.totalorder %s721_s20, %s564_s29  ;;  %p567_p1 = scmp.lt.s32.totalorder %s565_s30, %s559_s27 }
  0x1b   : > { %495 = vmatprep.mubr.msk.bf16.mxu0 %vm194_vm1, %v183_v6 }
  0x1c   : > { %496 = vmatmul.mubr.msk.bf16.vlgmr.msra.gmra.mrb[0].mxu0 %vm194_vm1, %v184_v8  ;;  %p568_p2 = por %p567_p1, %p566_p0 }
  0x1e   : > { %p569_p3 = pnand %p568_p2, %p562_p13 }
  0xef   : > { %v497_v10 = vpop.f32.mrb[0].mxu0 }
  0xf0   : > { %v239_v11 = vpop.f32.mrb[1].mxu0 }
  0xf1   : > { %v498_v12 = vpop.f32.mrb[2].mxu0 }
  0xf2   : > { %v255_v13 = vpack.c.bf16 %v498_v12, %v497_v10  ;;  %v242_v14 = vpop.f32.mrb[3].mxu0 }
  0xf3   : > { %v254_v15 = vpack.c.bf16 %v242_v14, %v239_v11 }
  0xf4   : > { %258 = vst.msk [vmem:[#allocation2 + $0x8] sm:$0xff] %vm256_vm3, %v255_v13 }
  0xf5   : > { %257 = vst.msk [vmem:[#allocation2] sm:$0xff] %vm256_vm3, %v254_v15 }
  0xfb   : > { %v327_v18 = vld [vmem:[#allocation2 + $0x8] sm:$0xff] }
  0xfc   : > { %v259_v16 = vld [vmem:[#allocation2] sm:$0xff] }
  0xfd   : > { %499 = vmatprep.subr.bf16.mxu1 %v259_v16 }
  0xfe   : > { %500 = vmatpush3.bf16.msra.mxu1 %v259_v16 }
  0xff   : > { %505 = vmatprep.subr.bf16.mxu1 %v327_v18 }
 0x101   : > { %502 = vmatmul.mubr.msk.bf16.vlgmr.msra.gmra.mrb[0].mxu1 %vm268_vm2, %v558_v17 }
 0x102   : > { %506 = vmatpush3.bf16.msra.mxu1 %v327_v18  ;;  %507 = vmatprep.mubr.msk.bf16.mxu1 %vm268_vm2, %v557_v9 }
 0x109   : > { %508 = vmatmul.mubr.msk.bf16.vlgmr.msra.gmra.mrb[4].mxu1 %vm268_vm2, %v558_v17 }
 0x1d4   : > { %v503_v19 = vpop.f32.mrb[0].mxu1 }
 0x1d5   : > { %325 = vst.msk [vmem:[%s164_s17 + $0x10] sm:$0xff] %vm256_vm3, %v503_v19  ;;  %v309_v20 = vpop.f32.mrb[1].mxu1 }
 0x1d6   : > { %323 = vst.msk [vmem:[%s164_s17] sm:$0xff] %vm256_vm3, %v309_v20  ;;  %v504_v21 = vpop.f32.mrb[2].mxu1 }
 0x1d7   : > { %v312_v22 = vpop.f32.mrb[3].mxu1 }
 0x1d8   : > { %324 = vst.msk [vmem:[%s164_s17 + $0x8] sm:$0xff] %vm256_vm3, %v312_v22 }
 0x1dc   : > { %v509_v23 = vpop.f32.mrb[4].mxu1 }
 0x1dd   : > { %475 = vst.msk [vmem:[%s164_s17 + $0x28] sm:$0xff] %vm256_vm3, %v509_v23  ;;  %v362_v24 = vpop.f32.mrb[5].mxu1 }
 0x1de   : > { %473 = vst.msk [vmem:[%s164_s17 + $0x18] sm:$0xff] %vm256_vm3, %v362_v24  ;;  %v510_v25 = vpop.f32.mrb[6].mxu1 }
 0x1df   : > { %v365_v26 = vpop.f32.mrb[7].mxu1 }
 0x1e0   : > { %474 = vst.msk [vmem:[%s164_s17 + $0x20] sm:$0xff] %vm256_vm3, %v365_v26 }
 0x1e1   : > { %572 = shalt.err (!%p569_p3)
}
 0x1e2   : > { %s573_s4 = scalar_lea.hbm %s727_s26, 768  ;;  %s577_s7 = scalar_lea.hbm %s775_s3, 3072 }
 0x1e3   : > { %p574_p4 = scmp.ne.s32.totalorder %s727_s26, %s573_s4  ;;  %p578_p9 = scmp.lt.u32.totalorder %s727_s26, %s775_s3 }
 0x1e4   : > { %p579_p10 = scmp.lt.u32.totalorder %s577_s7, %s573_s4  ;;  %p581_p12 = scmp.lt.u32.totalorder %s573_s4, %s727_s26 }
 0x1e5   : > { %p575_p7 = pnand %p574_p4, %p684_p5 }
 0x1e6   : > { %p580_p11 = por %p579_p10, %p578_p9 }
 0x1e7   : > { %p576_p8 = pneg %p575_p7 }
 0x1e8   : > { %p582_p13 = por %p581_p12, %p580_p11 }
 0x1ea   : > { %p583_p0 = pnand %p582_p13, %p576_p8 }
 0x1ec   : > { %586 = shalt.err (!%p583_p0)
}
 0x1ed   : > { %s624_s10 = smov 128   ;;  %s625_s11 = smov 8  }
 0x1ee   : > { %514 = dma.vmem_to_hbm [thread:$0]  (%p684_p5), %s721_s20, 768, %s727_s26, %s731_s16, %s624_s10, %s624_s10, %s625_s11  }
 0x1ef PF: > { %p520_p1 = scmp.ge.s32.totalorder %s621_s15, 2  ;;  %s410_s17 = sand.u32 1, %s609_s12  }
 0x1f0   : > { %s411_s19 = scalar_lea.sflag [#allocation4], %s410_s17 }
 0x1f1   : > { %p517_p2 = pnand %p520_p1, %p688_p6 }
 0x1f3   : > { %604 = dma.done.wait (!%p517_p2), %s411_s19, 768  }
 0x1f4   : > { %606 = vsyncadd (!%p517_p2), %s411_s19, 4294966528  ;;  %p13_p3 = scmp.ge.s32.totalorder %s671_s18, 6   ;;  %s778_s12 = smov %s613_s13 }
 0x1f5   : > { %s779_s13 = smov %s617_s14  ;;  %s780_s14 = smov %s682_s21 }
 0x1f6   : > { %s781_s15 = smov %s671_s18  ;;  %15 = sbr.rel (!%p13_p3) target bundleno = 3 (0x3), region = 69 }
 0x1fd   :  { %416 = vsyncpa [#allocation4], 1 }
 0x1fe   :  { %418 = vsyncpa [#allocation4 + $0x1], 1 }

</bundles_post_ra>
